<compile_context>
chip_gen: v7x
topology: tpu7x:2x2x1
jax: 0.10.0
libtpu: 0.0.40
codegen_flags: <defaults>
</compile_context>

<pallas_src>
import math

import jax
import jax.numpy as jnp
from jax.experimental import pallas as pl
from jax.experimental.pallas import tpu as pltpu

_LANE = 128


def _round_up(x, m):
    return ((x + m - 1) // m) * m


def _make_hmcan_kernel(B, S, D, H_pad):
    """Fused kernel body for static shapes (batch B, seq S, channels D, padded classes H_pad)."""
    inv_sqrt_d = 1.0 / math.sqrt(D)

    def shift_rows(z, nL, direction):
        """Row shift within the flattened (nL, D) layout.
        direction=+1 -> row l holds z[l-1]; direction=-1 -> row l holds z[l+1].
        Rows that wrap across item boundaries are zeroed by the caller's mask."""
        if nL % 8 == 0:
            # XLU sublane rotation: no VMEM copy, off the VPU critical path.
            shift = 1 if direction > 0 else nL - 1     # -1 expressed as +nL-1
            return pltpu.roll(z, shift=shift, axis=0)
        # Tiny fallback (stage 2 with small batch): concat-based shift.
        zrow = jnp.zeros((1, z.shape[1]), z.dtype)
        if direction > 0:
            return jnp.concatenate([zrow, z[:-1, :]], axis=0)
        return jnp.concatenate([z[1:, :], zrow], axis=0)

    def csa_ta(z_flat, w0, w1, w2, bconv, t, n, L):
        """ConvolutionalSelfAttention + TargetAttention over n independent
        length-L sequences flattened to (n*L, D); returns (n, D)."""
        nL = n * L
        row = jax.lax.broadcasted_iota(jnp.int32, (nL, 1), 0)
        has_prev = (row % L) != 0          # row l-1 exists inside the same item
        has_next = (row % L) != (L - 1)    # row l+1 exists inside the same item

        def conv1d(z):
            # Conv1d(k=3, padding=1): out[l] = x[l-1]@w0 + x[l]@w1 + x[l+1]@w2 + b
            # Three K=D bf16 MXU dots with a shared f32 accumulator (no lane-axis
            # concat into a (nL, 3D) operand -> no relayout / repack).
            z_prev = jnp.where(has_prev, shift_rows(z, nL, +1), 0.0)
            z_next = jnp.where(has_next, shift_rows(z, nL, -1), 0.0)
            acc = jnp.dot(z.astype(jnp.bfloat16), w1,
                          preferred_element_type=jnp.float32)
            acc = acc + jnp.dot(z_prev.astype(jnp.bfloat16), w0,
                                preferred_element_type=jnp.float32)
            acc = acc + jnp.dot(z_next.astype(jnp.bfloat16), w2,
                                preferred_element_type=jnp.float32)
            return acc + bconv                                            # (nL, D) f32

        h1 = jnp.maximum(conv1d(z_flat), 0.0)
        h2 = jnp.maximum(conv1d(h1) + z_flat, 0.0)

        # F.layer_norm over all (D, L) entries of each item (no affine, eps=1e-5).
        h3 = h2.reshape(n, L, D)
        denom = 1.0 / (L * D)
        mean = jnp.sum(jnp.sum(h3, axis=2, keepdims=True),
                       axis=1, keepdims=True) * denom                     # (n,1,1)
        c = h3 - mean
        var = jnp.sum(jnp.sum(c * c, axis=2, keepdims=True),
                      axis=1, keepdims=True) * denom
        ln = c * jax.lax.rsqrt(var + 1e-5)

        # Target attention (TA dropout is identity in eval mode).
        scores = jnp.sum(ln * t[None, :, :], axis=2, keepdims=True) * inv_sqrt_d  # (n,L,1)
        m = jnp.max(scores, axis=1, keepdims=True)
        e = jnp.exp(scores - m)
        p = e * pl.reciprocal(jnp.sum(e, axis=1, keepdims=True), approx=True)
        return jnp.sum(ln * p, axis=1)                                             # (n, D)

    def kernel(x_ref, w0_ref, w1_ref, w2_ref, bconv_ref, target_ref,
               clsw_ref, clsb_ref, out_ref):
        x = x_ref[...].reshape(B * S, D)       # (B*S, D) f32 token rows
        w0 = w0_ref[...]                       # (D, D) bf16  (k=0 tap)
        w1 = w1_ref[...]                       # (D, D) bf16  (k=1 tap)
        w2 = w2_ref[...]                       # (D, D) bf16  (k=2 tap)
        bconv = bconv_ref[...]                 # (1, D)  f32
        t = target_ref[...]                    # (1, D)  f32, lane-dense

        # Stage 1: per-sequence csa + ta -> (B, D).
        h = csa_ta(x, w0, w1, w2, bconv, t, B, S)
        # Stage 2: the batch axis becomes the "sequence" (PyTorch permute to
        # (1, D, B)).  Note: degenerates (all conv neighbours zero) when B == 1.
        g = csa_ta(h, w0, w1, w2, bconv, t, 1, B)          # (1, D)
        # Final classifier: lane-dense (1, H_pad) unmasked store, f32 accumulation.
        out_ref[...] = (jnp.dot(g.astype(jnp.bfloat16), clsw_ref[...],
                                preferred_element_type=jnp.float32) + clsb_ref[...])

    return kernel


def hmcan_predict(x_ids, params, *, num_classes):
    """Embedding lookup (plain JAX) + fused Pallas kernel.  Returns (1, num_classes) logits."""
    # TODO(synk): the data-dependent embedding gather stays in plain JAX/XLA; a
    # manual-DMA Pallas gather is not worth it at these sizes.
    emb = params["emb1"][x_ids] + params["emb2"][x_ids]          # (B, S, D) f32
    B, S, D = emb.shape
    H_pad = params["cls_b"].shape[-1]

    kernel = _make_hmcan_kernel(B, S, D, H_pad)
    flops = int(2 * 3 * 2 * (B * S) * D * D        # stage-1 convs (2 convs x 3 taps)
                + 2 * 3 * 2 * B * D * D            # stage-2 convs
                + 2 * D * H_pad)                   # classifier
    bytes_accessed = int(emb.size * 4
                         + 3 * D * D * 2           # conv taps, bf16
                         + D * H_pad * 2           # classifier weight, bf16
                         + (2 * D) * 4             # conv bias + target
                         + 2 * H_pad * 4)          # classifier bias + output
    cost = pl.CostEstimate(flops=flops,
                           transcendentals=int(B * S + B + 8),
                           bytes_accessed=bytes_accessed)

    vmem = pl.BlockSpec(memory_space=pltpu.MemorySpace.VMEM)
    out_pad = pl.pallas_call(
        kernel,
        out_shape=jax.ShapeDtypeStruct((1, H_pad), jnp.float32),
        in_specs=[vmem] * 8,
        out_specs=vmem,
        cost_estimate=cost,
        # Explicit budget (kernel needs only a few hundred KiB); well inside the
        # v7x 64 MiB / 32 MiB-scoped limit as well as v5e/v6e defaults.
        compiler_params=pltpu.CompilerParams(vmem_limit_bytes=16 * 1024 * 1024),
    )(emb, params["w0"], params["w1"], params["w2"], params["bconv"],
      params["target"], params["cls_w_t"], params["cls_b"])
    return out_pad[:, :num_classes]


def make_params(key, num_emb, d, h):
    ks = jax.random.split(key, 7)
    emb1 = jax.random.normal(ks[0], (num_emb, d), jnp.float32) * 0.1
    emb2 = jax.random.normal(ks[1], (num_emb, d), jnp.float32) * math.sqrt(2.0 / (num_emb + d))
    kb = math.sqrt(6.0 / (d * 3))
    conv_w = jax.random.uniform(ks[2], (d, d, 3), jnp.float32, -kb, kb)   # (Cout, Cin, K)
    bb = 1.0 / math.sqrt(d * 3)
    conv_b = jax.random.uniform(ks[3], (d,), jnp.float32, -bb, bb)
    tb = math.sqrt(6.0 / d)
    target = jax.random.uniform(ks[4], (d, 1), jnp.float32, -tb, tb)
    cls_w = jax.random.normal(ks[5], (h, d), jnp.float32) * math.sqrt(2.0 / (d + h))
    lb = 1.0 / math.sqrt(d)
    cls_b = jax.random.uniform(ks[6], (h,), jnp.float32, -lb, lb)

    # Conv taps as three (D, D) bf16 MXU operands: wk = conv_w[:, :, k].T pairs
    # with the row shifted by (k - 1) (x_{l-1} | x_l | x_{l+1}).
    w0 = conv_w[:, :, 0].T.astype(jnp.bfloat16)
    w1 = conv_w[:, :, 1].T.astype(jnp.bfloat16)
    w2 = conv_w[:, :, 2].T.astype(jnp.bfloat16)

    # Classifier padded to a lane-dense 128-wide output (wrapper slices to h).
    h_pad = max(_LANE, _round_up(h, _LANE))
    cls_w_t = jnp.zeros((d, h_pad), jnp.float32).at[:, :h].set(cls_w.T).astype(jnp.bfloat16)
    cls_b_pad = jnp.zeros((1, h_pad), jnp.float32).at[:, :h].set(cls_b)

    return {
        "emb1": emb1,
        "emb2": emb2,
        "w0": w0,                                   # (D, D) bf16
        "w1": w1,                                   # (D, D) bf16
        "w2": w2,                                   # (D, D) bf16
        "bconv": conv_b[None, :],                   # (1, D)  f32
        "target": target.reshape(1, d),             # (1, D)  lane-dense
        "cls_w_t": cls_w_t,                         # (D, 128) bf16, zero-padded
        "cls_b": cls_b_pad,                         # (1, 128) f32, zero-padded
    }


if __name__ == "__main__":
    # small synthetic shapes consistent with the forward:
    #   vocabulary=64, input_dim D=32, hidden_dim (num classes) H=4,
    #   batch B=2, sequence length S=16.
    NUM_EMB, D, H, B, S = 64, 32, 4, 2, 16

    key = jax.random.PRNGKey(0)
    pkey, xkey = jax.random.split(key)
    params = make_params(pkey, NUM_EMB, D, H)
    x_ids = jax.random.randint(xkey, (B, S), 0, NUM_EMB)

    fn = jax.jit(hmcan_predict, static_argnames=("num_classes",))
    logits = fn(x_ids, params, num_classes=H)
    logits = jax.block_until_ready(logits)
    assert logits.shape == (1, H)
    print("KERNEL_OK")
</pallas_src>

<mosaic_0001>
module attributes {stable_mosaic.version = 11 : i64} {
  func.func @kernel(%arg0: memref<2x16x32xf32, #tpu.memory_space<vmem>>, %arg1: memref<32x32xbf16, #tpu.memory_space<vmem>>, %arg2: memref<32x32xbf16, #tpu.memory_space<vmem>>, %arg3: memref<32x32xbf16, #tpu.memory_space<vmem>>, %arg4: memref<1x32xf32, #tpu.memory_space<vmem>>, %arg5: memref<1x32xf32, #tpu.memory_space<vmem>>, %arg6: memref<32x128xbf16, #tpu.memory_space<vmem>>, %arg7: memref<1x128xf32, #tpu.memory_space<vmem>>, %arg8: memref<1x128xf32, #tpu.memory_space<vmem>>) attributes {dimension_semantics = [], scalar_prefetch = 0 : i64, scratch_operands = 0 : i64, tpu.core_type = #tpu.core_type<tc>} {
    %c0 = arith.constant 0 : index
    %c0_0 = arith.constant 0 : index
    %c0_1 = arith.constant 0 : index
    %0 = vector.load %arg0[%c0, %c0_0, %c0_1] : memref<2x16x32xf32, #tpu.memory_space<vmem>>, vector<2x16x32xf32>
    %1 = vector.shape_cast %0 : vector<2x16x32xf32> to vector<32x32xf32>
    %c0_2 = arith.constant 0 : index
    %c0_3 = arith.constant 0 : index
    %2 = vector.load %arg1[%c0_2, %c0_3] : memref<32x32xbf16, #tpu.memory_space<vmem>>, vector<32x32xbf16>
    %c0_4 = arith.constant 0 : index
    %c0_5 = arith.constant 0 : index
    %3 = vector.load %arg2[%c0_4, %c0_5] : memref<32x32xbf16, #tpu.memory_space<vmem>>, vector<32x32xbf16>
    %c0_6 = arith.constant 0 : index
    %c0_7 = arith.constant 0 : index
    %4 = vector.load %arg3[%c0_6, %c0_7] : memref<32x32xbf16, #tpu.memory_space<vmem>>, vector<32x32xbf16>
    %c0_8 = arith.constant 0 : index
    %c0_9 = arith.constant 0 : index
    %5 = vector.load %arg4[%c0_8, %c0_9] : memref<1x32xf32, #tpu.memory_space<vmem>>, vector<1x32xf32>
    %c0_10 = arith.constant 0 : index
    %c0_11 = arith.constant 0 : index
    %6 = vector.load %arg5[%c0_10, %c0_11] : memref<1x32xf32, #tpu.memory_space<vmem>>, vector<1x32xf32>
    %7 = tpu.iota {dimensions = array<i32: 0>} : vector<32x1xi32>
    %c16_i32 = arith.constant 16 : i32
    %c0_i32 = arith.constant 0 : i32
    %8 = arith.cmpi eq, %c16_i32, %c0_i32 : i32
    %c1_i32 = arith.constant 1 : i32
    %9 = arith.select %8, %c1_i32, %c16_i32 : i32
    %10 = vector.broadcast %9 : i32 to vector<32x1xi32>
    %11 = arith.remsi %7, %10 : vector<32x1xi32>
    %c0_i32_12 = arith.constant 0 : i32
    %12 = vector.broadcast %c0_i32_12 : i32 to vector<32x1xi32>
    %13 = arith.cmpi ne, %11, %12 : vector<32x1xi32>
    %c0_i32_13 = arith.constant 0 : i32
    %14 = vector.broadcast %c0_i32_13 : i32 to vector<32x1xi32>
    %15 = arith.cmpi slt, %11, %14 : vector<32x1xi32>
    %c0_i32_14 = arith.constant 0 : i32
    %16 = arith.cmpi slt, %9, %c0_i32_14 : i32
    %17 = vector.broadcast %16 : i1 to vector<32x1xi1>
    %18 = vector.broadcast %17 : vector<32x1xi1> to vector<32x1xi1>
    %19 = arith.xori %15, %18 : vector<32x1xi1>
    %20 = arith.andi %19, %13 : vector<32x1xi1>
    %21 = vector.broadcast %9 : i32 to vector<32x1xi32>
    %22 = arith.addi %11, %21 : vector<32x1xi32>
    %23 = arith.select %20, %22, %11 : vector<32x1xi1>, vector<32x1xi32>
    %c0_i32_15 = arith.constant 0 : i32
    %24 = vector.broadcast %c0_i32_15 : i32 to vector<32x1xi32>
    %25 = arith.cmpi ne, %23, %24 : vector<32x1xi32>
    %c16_i32_16 = arith.constant 16 : i32
    %c0_i32_17 = arith.constant 0 : i32
    %26 = arith.cmpi eq, %c16_i32_16, %c0_i32_17 : i32
    %c1_i32_18 = arith.constant 1 : i32
    %27 = arith.select %26, %c1_i32_18, %c16_i32_16 : i32
    %28 = vector.broadcast %27 : i32 to vector<32x1xi32>
    %29 = arith.remsi %7, %28 : vector<32x1xi32>
    %c0_i32_19 = arith.constant 0 : i32
    %30 = vector.broadcast %c0_i32_19 : i32 to vector<32x1xi32>
    %31 = arith.cmpi ne, %29, %30 : vector<32x1xi32>
    %c0_i32_20 = arith.constant 0 : i32
    %32 = vector.broadcast %c0_i32_20 : i32 to vector<32x1xi32>
    %33 = arith.cmpi slt, %29, %32 : vector<32x1xi32>
    %c0_i32_21 = arith.constant 0 : i32
    %34 = arith.cmpi slt, %27, %c0_i32_21 : i32
    %35 = vector.broadcast %34 : i1 to vector<32x1xi1>
    %36 = vector.broadcast %35 : vector<32x1xi1> to vector<32x1xi1>
    %37 = arith.xori %33, %36 : vector<32x1xi1>
    %38 = arith.andi %37, %31 : vector<32x1xi1>
    %39 = vector.broadcast %27 : i32 to vector<32x1xi32>
    %40 = arith.addi %29, %39 : vector<32x1xi32>
    %41 = arith.select %38, %40, %29 : vector<32x1xi1>, vector<32x1xi32>
    %c15_i32 = arith.constant 15 : i32
    %42 = vector.broadcast %c15_i32 : i32 to vector<32x1xi32>
    %43 = arith.cmpi ne, %41, %42 : vector<32x1xi32>
    %c1_i32_22 = arith.constant 1 : i32
    %44 = tpu.dynamic_rotate %1 by %c1_i32_22 dim 0 : vector<32x32xf32>, i32 -> vector<32x32xf32>
    %cst = arith.constant 0.000000e+00 : f32
    %45 = vector.shape_cast %25 : vector<32x1xi1> to vector<32x1xi1>
    %46 = vector.broadcast %45 : vector<32x1xi1> to vector<32x32xi1>
    %47 = vector.broadcast %cst : f32 to vector<32x32xf32>
    %48 = arith.select %46, %44, %47 : vector<32x32xi1>, vector<32x32xf32>
    %c31_i32 = arith.constant 31 : i32
    %49 = tpu.dynamic_rotate %1 by %c31_i32 dim 0 : vector<32x32xf32>, i32 -> vector<32x32xf32>
    %cst_23 = arith.constant 0.000000e+00 : f32
    %50 = vector.shape_cast %43 : vector<32x1xi1> to vector<32x1xi1>
    %51 = vector.broadcast %50 : vector<32x1xi1> to vector<32x32xi1>
    %52 = vector.broadcast %cst_23 : f32 to vector<32x32xf32>
    %53 = arith.select %51, %49, %52 : vector<32x32xi1>, vector<32x32xf32>
    %54 = arith.truncf %1 : vector<32x32xf32> to vector<32x32xbf16>
    %cst_24 = arith.constant dense<0.000000e+00> : vector<32x32xf32>
    %55 = tpu.matmul %54, %3, %cst_24 {dimension_numbers = #tpu.dot_dimension_numbers<[1], [0], [0], [1], [0, 0, 1, 1], [], []>} : vector<32x32xbf16>, vector<32x32xbf16>, vector<32x32xf32> -> vector<32x32xf32>
    %56 = arith.truncf %48 : vector<32x32xf32> to vector<32x32xbf16>
    %cst_25 = arith.constant dense<0.000000e+00> : vector<32x32xf32>
    %57 = tpu.matmul %56, %2, %cst_25 {dimension_numbers = #tpu.dot_dimension_numbers<[1], [0], [0], [1], [0, 0, 1, 1], [], []>} : vector<32x32xbf16>, vector<32x32xbf16>, vector<32x32xf32> -> vector<32x32xf32>
    %58 = arith.addf %55, %57 : vector<32x32xf32>
    %59 = arith.truncf %53 : vector<32x32xf32> to vector<32x32xbf16>
    %cst_26 = arith.constant dense<0.000000e+00> : vector<32x32xf32>
    %60 = tpu.matmul %59, %4, %cst_26 {dimension_numbers = #tpu.dot_dimension_numbers<[1], [0], [0], [1], [0, 0, 1, 1], [], []>} : vector<32x32xbf16>, vector<32x32xbf16>, vector<32x32xf32> -> vector<32x32xf32>
    %61 = arith.addf %58, %60 : vector<32x32xf32>
    %62 = vector.broadcast %5 : vector<1x32xf32> to vector<32x32xf32>
    %63 = arith.addf %61, %62 : vector<32x32xf32>
    %cst_27 = arith.constant 0.000000e+00 : f32
    %64 = vector.broadcast %cst_27 : f32 to vector<32x32xf32>
    %65 = arith.maximumf %63, %64 : vector<32x32xf32>
    %c1_i32_28 = arith.constant 1 : i32
    %66 = tpu.dynamic_rotate %65 by %c1_i32_28 dim 0 : vector<32x32xf32>, i32 -> vector<32x32xf32>
    %cst_29 = arith.constant 0.000000e+00 : f32
    %67 = vector.shape_cast %25 : vector<32x1xi1> to vector<32x1xi1>
    %68 = vector.broadcast %67 : vector<32x1xi1> to vector<32x32xi1>
    %69 = vector.broadcast %cst_29 : f32 to vector<32x32xf32>
    %70 = arith.select %68, %66, %69 : vector<32x32xi1>, vector<32x32xf32>
    %c31_i32_30 = arith.constant 31 : i32
    %71 = tpu.dynamic_rotate %65 by %c31_i32_30 dim 0 : vector<32x32xf32>, i32 -> vector<32x32xf32>
    %cst_31 = arith.constant 0.000000e+00 : f32
    %72 = vector.shape_cast %43 : vector<32x1xi1> to vector<32x1xi1>
    %73 = vector.broadcast %72 : vector<32x1xi1> to vector<32x32xi1>
    %74 = vector.broadcast %cst_31 : f32 to vector<32x32xf32>
    %75 = arith.select %73, %71, %74 : vector<32x32xi1>, vector<32x32xf32>
    %76 = arith.truncf %65 : vector<32x32xf32> to vector<32x32xbf16>
    %cst_32 = arith.constant dense<0.000000e+00> : vector<32x32xf32>
    %77 = tpu.matmul %76, %3, %cst_32 {dimension_numbers = #tpu.dot_dimension_numbers<[1], [0], [0], [1], [0, 0, 1, 1], [], []>} : vector<32x32xbf16>, vector<32x32xbf16>, vector<32x32xf32> -> vector<32x32xf32>
    %78 = arith.truncf %70 : vector<32x32xf32> to vector<32x32xbf16>
    %cst_33 = arith.constant dense<0.000000e+00> : vector<32x32xf32>
    %79 = tpu.matmul %78, %2, %cst_33 {dimension_numbers = #tpu.dot_dimension_numbers<[1], [0], [0], [1], [0, 0, 1, 1], [], []>} : vector<32x32xbf16>, vector<32x32xbf16>, vector<32x32xf32> -> vector<32x32xf32>
    %80 = arith.addf %77, %79 : vector<32x32xf32>
    %81 = arith.truncf %75 : vector<32x32xf32> to vector<32x32xbf16>
    %cst_34 = arith.constant dense<0.000000e+00> : vector<32x32xf32>
    %82 = tpu.matmul %81, %4, %cst_34 {dimension_numbers = #tpu.dot_dimension_numbers<[1], [0], [0], [1], [0, 0, 1, 1], [], []>} : vector<32x32xbf16>, vector<32x32xbf16>, vector<32x32xf32> -> vector<32x32xf32>
    %83 = arith.addf %80, %82 : vector<32x32xf32>
    %84 = vector.broadcast %5 : vector<1x32xf32> to vector<32x32xf32>
    %85 = arith.addf %83, %84 : vector<32x32xf32>
    %86 = arith.addf %85, %1 : vector<32x32xf32>
    %cst_35 = arith.constant 0.000000e+00 : f32
    %87 = vector.broadcast %cst_35 : f32 to vector<32x32xf32>
    %88 = arith.maximumf %86, %87 : vector<32x32xf32>
    %89 = vector.shape_cast %88 : vector<32x32xf32> to vector<2x16x32xf32>
    %cst_36 = arith.constant dense<0.000000e+00> : vector<2x16xf32>
    %90 = vector.multi_reduction <add>, %89, %cst_36 [2] : vector<2x16x32xf32> to vector<2x16xf32>
    %91 = vector.shape_cast %90 : vector<2x16xf32> to vector<2x16x1xf32>
    %cst_37 = arith.constant dense<0.000000e+00> : vector<2x1xf32>
    %92 = vector.multi_reduction <add>, %91, %cst_37 [1] : vector<2x16x1xf32> to vector<2x1xf32>
    %93 = vector.shape_cast %92 : vector<2x1xf32> to vector<2x1x1xf32>
    %cst_38 = arith.constant 0.001953125 : f32
    %94 = vector.broadcast %cst_38 : f32 to vector<2x1x1xf32>
    %95 = arith.mulf %93, %94 : vector<2x1x1xf32>
    %96 = vector.broadcast %95 : vector<2x1x1xf32> to vector<2x16x32xf32>
    %97 = arith.subf %89, %96 : vector<2x16x32xf32>
    %98 = arith.mulf %97, %97 : vector<2x16x32xf32>
    %cst_39 = arith.constant dense<0.000000e+00> : vector<2x16xf32>
    %99 = vector.multi_reduction <add>, %98, %cst_39 [2] : vector<2x16x32xf32> to vector<2x16xf32>
    %100 = vector.shape_cast %99 : vector<2x16xf32> to vector<2x16x1xf32>
    %cst_40 = arith.constant dense<0.000000e+00> : vector<2x1xf32>
    %101 = vector.multi_reduction <add>, %100, %cst_40 [1] : vector<2x16x1xf32> to vector<2x1xf32>
    %102 = vector.shape_cast %101 : vector<2x1xf32> to vector<2x1x1xf32>
    %cst_41 = arith.constant 0.001953125 : f32
    %103 = vector.broadcast %cst_41 : f32 to vector<2x1x1xf32>
    %104 = arith.mulf %102, %103 : vector<2x1x1xf32>
    %cst_42 = arith.constant 9.99999974E-6 : f32
    %105 = vector.broadcast %cst_42 : f32 to vector<2x1x1xf32>
    %106 = arith.addf %104, %105 : vector<2x1x1xf32>
    %107 = math.rsqrt %106 : vector<2x1x1xf32>
    %108 = vector.broadcast %107 : vector<2x1x1xf32> to vector<2x16x32xf32>
    %109 = arith.mulf %97, %108 : vector<2x16x32xf32>
    %110 = vector.shape_cast %6 : vector<1x32xf32> to vector<1x1x32xf32>
    %111 = vector.broadcast %110 : vector<1x1x32xf32> to vector<2x16x32xf32>
    %112 = arith.mulf %109, %111 : vector<2x16x32xf32>
    %cst_43 = arith.constant dense<0.000000e+00> : vector<2x16xf32>
    %113 = vector.multi_reduction <add>, %112, %cst_43 [2] : vector<2x16x32xf32> to vector<2x16xf32>
    %114 = vector.shape_cast %113 : vector<2x16xf32> to vector<2x16x1xf32>
    %cst_44 = arith.constant 0.176776692 : f32
    %115 = vector.broadcast %cst_44 : f32 to vector<2x16x1xf32>
    %116 = arith.mulf %114, %115 : vector<2x16x1xf32>
    %cst_45 = arith.constant dense<0xFF800000> : vector<2x1xf32>
    %117 = vector.multi_reduction <maximumf>, %116, %cst_45 [1] : vector<2x16x1xf32> to vector<2x1xf32>
    %118 = vector.shape_cast %117 : vector<2x1xf32> to vector<2x1x1xf32>
    %119 = vector.broadcast %118 : vector<2x1x1xf32> to vector<2x16x1xf32>
    %120 = arith.subf %116, %119 : vector<2x16x1xf32>
    %121 = math.exp %120 : vector<2x16x1xf32>
    %cst_46 = arith.constant dense<0.000000e+00> : vector<2x1xf32>
    %122 = vector.multi_reduction <add>, %121, %cst_46 [1] : vector<2x16x1xf32> to vector<2x1xf32>
    %123 = vector.shape_cast %122 : vector<2x1xf32> to vector<2x1x1xf32>
    %124 = tpu.reciprocal %123 {approx = true} : vector<2x1x1xf32> -> vector<2x1x1xf32>
    %125 = vector.broadcast %124 : vector<2x1x1xf32> to vector<2x16x1xf32>
    %126 = arith.mulf %121, %125 : vector<2x16x1xf32>
    %127 = vector.broadcast %126 : vector<2x16x1xf32> to vector<2x16x32xf32>
    %128 = arith.mulf %109, %127 : vector<2x16x32xf32>
    %cst_47 = arith.constant dense<0.000000e+00> : vector<2x32xf32>
    %129 = vector.multi_reduction <add>, %128, %cst_47 [1] : vector<2x16x32xf32> to vector<2x32xf32>
    %130 = tpu.iota {dimensions = array<i32: 0>} : vector<2x1xi32>
    %c2_i32 = arith.constant 2 : i32
    %c0_i32_48 = arith.constant 0 : i32
    %131 = arith.cmpi eq, %c2_i32, %c0_i32_48 : i32
    %c1_i32_49 = arith.constant 1 : i32
    %132 = arith.select %131, %c1_i32_49, %c2_i32 : i32
    %133 = vector.broadcast %132 : i32 to vector<2x1xi32>
    %134 = arith.remsi %130, %133 : vector<2x1xi32>
    %c0_i32_50 = arith.constant 0 : i32
    %135 = vector.broadcast %c0_i32_50 : i32 to vector<2x1xi32>
    %136 = arith.cmpi ne, %134, %135 : vector<2x1xi32>
    %c0_i32_51 = arith.constant 0 : i32
    %137 = vector.broadcast %c0_i32_51 : i32 to vector<2x1xi32>
    %138 = arith.cmpi slt, %134, %137 : vector<2x1xi32>
    %c0_i32_52 = arith.constant 0 : i32
    %139 = arith.cmpi slt, %132, %c0_i32_52 : i32
    %140 = vector.broadcast %139 : i1 to vector<2x1xi1>
    %141 = vector.broadcast %140 : vector<2x1xi1> to vector<2x1xi1>
    %142 = arith.xori %138, %141 : vector<2x1xi1>
    %143 = arith.andi %142, %136 : vector<2x1xi1>
    %144 = vector.broadcast %132 : i32 to vector<2x1xi32>
    %145 = arith.addi %134, %144 : vector<2x1xi32>
    %146 = arith.select %143, %145, %134 : vector<2x1xi1>, vector<2x1xi32>
    %c0_i32_53 = arith.constant 0 : i32
    %147 = vector.broadcast %c0_i32_53 : i32 to vector<2x1xi32>
    %148 = arith.cmpi ne, %146, %147 : vector<2x1xi32>
    %c2_i32_54 = arith.constant 2 : i32
    %c0_i32_55 = arith.constant 0 : i32
    %149 = arith.cmpi eq, %c2_i32_54, %c0_i32_55 : i32
    %c1_i32_56 = arith.constant 1 : i32
    %150 = arith.select %149, %c1_i32_56, %c2_i32_54 : i32
    %151 = vector.broadcast %150 : i32 to vector<2x1xi32>
    %152 = arith.remsi %130, %151 : vector<2x1xi32>
    %c0_i32_57 = arith.constant 0 : i32
    %153 = vector.broadcast %c0_i32_57 : i32 to vector<2x1xi32>
    %154 = arith.cmpi ne, %152, %153 : vector<2x1xi32>
    %c0_i32_58 = arith.constant 0 : i32
    %155 = vector.broadcast %c0_i32_58 : i32 to vector<2x1xi32>
    %156 = arith.cmpi slt, %152, %155 : vector<2x1xi32>
    %c0_i32_59 = arith.constant 0 : i32
    %157 = arith.cmpi slt, %150, %c0_i32_59 : i32
    %158 = vector.broadcast %157 : i1 to vector<2x1xi1>
    %159 = vector.broadcast %158 : vector<2x1xi1> to vector<2x1xi1>
    %160 = arith.xori %156, %159 : vector<2x1xi1>
    %161 = arith.andi %160, %154 : vector<2x1xi1>
    %162 = vector.broadcast %150 : i32 to vector<2x1xi32>
    %163 = arith.addi %152, %162 : vector<2x1xi32>
    %164 = arith.select %161, %163, %152 : vector<2x1xi1>, vector<2x1xi32>
    %c1_i32_60 = arith.constant 1 : i32
    %165 = vector.broadcast %c1_i32_60 : i32 to vector<2x1xi32>
    %166 = arith.cmpi ne, %164, %165 : vector<2x1xi32>
    %cst_61 = arith.constant 0.000000e+00 : f32
    %167 = vector.broadcast %cst_61 : f32 to vector<1x32xf32>
    %168 = vector.extract_strided_slice %129 {offsets = [0, 0], sizes = [1, 32], strides = [1, 1]} : vector<2x32xf32> to vector<1x32xf32>
    %169 = tpu.concatenate %167, %168 in 0 : vector<1x32xf32>, vector<1x32xf32> -> vector<2x32xf32>
    %cst_62 = arith.constant 0.000000e+00 : f32
    %170 = vector.shape_cast %148 : vector<2x1xi1> to vector<2x1xi1>
    %171 = vector.broadcast %170 : vector<2x1xi1> to vector<2x32xi1>
    %172 = vector.broadcast %cst_62 : f32 to vector<2x32xf32>
    %173 = arith.select %171, %169, %172 : vector<2x32xi1>, vector<2x32xf32>
    %cst_63 = arith.constant 0.000000e+00 : f32
    %174 = vector.broadcast %cst_63 : f32 to vector<1x32xf32>
    %175 = vector.extract_strided_slice %129 {offsets = [1, 0], sizes = [1, 32], strides = [1, 1]} : vector<2x32xf32> to vector<1x32xf32>
    %176 = tpu.concatenate %175, %174 in 0 : vector<1x32xf32>, vector<1x32xf32> -> vector<2x32xf32>
    %cst_64 = arith.constant 0.000000e+00 : f32
    %177 = vector.shape_cast %166 : vector<2x1xi1> to vector<2x1xi1>
    %178 = vector.broadcast %177 : vector<2x1xi1> to vector<2x32xi1>
    %179 = vector.broadcast %cst_64 : f32 to vector<2x32xf32>
    %180 = arith.select %178, %176, %179 : vector<2x32xi1>, vector<2x32xf32>
    %181 = arith.truncf %129 : vector<2x32xf32> to vector<2x32xbf16>
    %cst_65 = arith.constant dense<0.000000e+00> : vector<2x32xf32>
    %182 = tpu.matmul %181, %3, %cst_65 {dimension_numbers = #tpu.dot_dimension_numbers<[1], [0], [0], [1], [0, 0, 1, 1], [], []>} : vector<2x32xbf16>, vector<32x32xbf16>, vector<2x32xf32> -> vector<2x32xf32>
    %183 = arith.truncf %173 : vector<2x32xf32> to vector<2x32xbf16>
    %cst_66 = arith.constant dense<0.000000e+00> : vector<2x32xf32>
    %184 = tpu.matmul %183, %2, %cst_66 {dimension_numbers = #tpu.dot_dimension_numbers<[1], [0], [0], [1], [0, 0, 1, 1], [], []>} : vector<2x32xbf16>, vector<32x32xbf16>, vector<2x32xf32> -> vector<2x32xf32>
    %185 = arith.addf %182, %184 : vector<2x32xf32>
    %186 = arith.truncf %180 : vector<2x32xf32> to vector<2x32xbf16>
    %cst_67 = arith.constant dense<0.000000e+00> : vector<2x32xf32>
    %187 = tpu.matmul %186, %4, %cst_67 {dimension_numbers = #tpu.dot_dimension_numbers<[1], [0], [0], [1], [0, 0, 1, 1], [], []>} : vector<2x32xbf16>, vector<32x32xbf16>, vector<2x32xf32> -> vector<2x32xf32>
    %188 = arith.addf %185, %187 : vector<2x32xf32>
    %189 = vector.broadcast %5 : vector<1x32xf32> to vector<2x32xf32>
    %190 = arith.addf %188, %189 : vector<2x32xf32>
    %cst_68 = arith.constant 0.000000e+00 : f32
    %191 = vector.broadcast %cst_68 : f32 to vector<2x32xf32>
    %192 = arith.maximumf %190, %191 : vector<2x32xf32>
    %cst_69 = arith.constant 0.000000e+00 : f32
    %193 = vector.broadcast %cst_69 : f32 to vector<1x32xf32>
    %194 = vector.extract_strided_slice %192 {offsets = [0, 0], sizes = [1, 32], strides = [1, 1]} : vector<2x32xf32> to vector<1x32xf32>
    %195 = tpu.concatenate %193, %194 in 0 : vector<1x32xf32>, vector<1x32xf32> -> vector<2x32xf32>
    %cst_70 = arith.constant 0.000000e+00 : f32
    %196 = vector.shape_cast %148 : vector<2x1xi1> to vector<2x1xi1>
    %197 = vector.broadcast %196 : vector<2x1xi1> to vector<2x32xi1>
    %198 = vector.broadcast %cst_70 : f32 to vector<2x32xf32>
    %199 = arith.select %197, %195, %198 : vector<2x32xi1>, vector<2x32xf32>
    %cst_71 = arith.constant 0.000000e+00 : f32
    %200 = vector.broadcast %cst_71 : f32 to vector<1x32xf32>
    %201 = vector.extract_strided_slice %192 {offsets = [1, 0], sizes = [1, 32], strides = [1, 1]} : vector<2x32xf32> to vector<1x32xf32>
    %202 = tpu.concatenate %201, %200 in 0 : vector<1x32xf32>, vector<1x32xf32> -> vector<2x32xf32>
    %cst_72 = arith.constant 0.000000e+00 : f32
    %203 = vector.shape_cast %166 : vector<2x1xi1> to vector<2x1xi1>
    %204 = vector.broadcast %203 : vector<2x1xi1> to vector<2x32xi1>
    %205 = vector.broadcast %cst_72 : f32 to vector<2x32xf32>
    %206 = arith.select %204, %202, %205 : vector<2x32xi1>, vector<2x32xf32>
    %207 = arith.truncf %192 : vector<2x32xf32> to vector<2x32xbf16>
    %cst_73 = arith.constant dense<0.000000e+00> : vector<2x32xf32>
    %208 = tpu.matmul %207, %3, %cst_73 {dimension_numbers = #tpu.dot_dimension_numbers<[1], [0], [0], [1], [0, 0, 1, 1], [], []>} : vector<2x32xbf16>, vector<32x32xbf16>, vector<2x32xf32> -> vector<2x32xf32>
    %209 = arith.truncf %199 : vector<2x32xf32> to vector<2x32xbf16>
    %cst_74 = arith.constant dense<0.000000e+00> : vector<2x32xf32>
    %210 = tpu.matmul %209, %2, %cst_74 {dimension_numbers = #tpu.dot_dimension_numbers<[1], [0], [0], [1], [0, 0, 1, 1], [], []>} : vector<2x32xbf16>, vector<32x32xbf16>, vector<2x32xf32> -> vector<2x32xf32>
    %211 = arith.addf %208, %210 : vector<2x32xf32>
    %212 = arith.truncf %206 : vector<2x32xf32> to vector<2x32xbf16>
    %cst_75 = arith.constant dense<0.000000e+00> : vector<2x32xf32>
    %213 = tpu.matmul %212, %4, %cst_75 {dimension_numbers = #tpu.dot_dimension_numbers<[1], [0], [0], [1], [0, 0, 1, 1], [], []>} : vector<2x32xbf16>, vector<32x32xbf16>, vector<2x32xf32> -> vector<2x32xf32>
    %214 = arith.addf %211, %213 : vector<2x32xf32>
    %215 = vector.broadcast %5 : vector<1x32xf32> to vector<2x32xf32>
    %216 = arith.addf %214, %215 : vector<2x32xf32>
    %217 = arith.addf %216, %129 : vector<2x32xf32>
    %cst_76 = arith.constant 0.000000e+00 : f32
    %218 = vector.broadcast %cst_76 : f32 to vector<2x32xf32>
    %219 = arith.maximumf %217, %218 : vector<2x32xf32>
    %220 = vector.shape_cast %219 : vector<2x32xf32> to vector<1x2x32xf32>
    %cst_77 = arith.constant dense<0.000000e+00> : vector<1x2xf32>
    %221 = vector.multi_reduction <add>, %220, %cst_77 [2] : vector<1x2x32xf32> to vector<1x2xf32>
    %222 = vector.shape_cast %221 : vector<1x2xf32> to vector<1x2x1xf32>
    %cst_78 = arith.constant dense<0.000000e+00> : vector<1x1xf32>
    %223 = vector.multi_reduction <add>, %222, %cst_78 [1] : vector<1x2x1xf32> to vector<1x1xf32>
    %224 = vector.shape_cast %223 : vector<1x1xf32> to vector<1x1x1xf32>
    %cst_79 = arith.constant 1.562500e-02 : f32
    %225 = vector.broadcast %cst_79 : f32 to vector<1x1x1xf32>
    %226 = arith.mulf %224, %225 : vector<1x1x1xf32>
    %227 = vector.broadcast %226 : vector<1x1x1xf32> to vector<1x2x32xf32>
    %228 = arith.subf %220, %227 : vector<1x2x32xf32>
    %229 = arith.mulf %228, %228 : vector<1x2x32xf32>
    %cst_80 = arith.constant dense<0.000000e+00> : vector<1x2xf32>
    %230 = vector.multi_reduction <add>, %229, %cst_80 [2] : vector<1x2x32xf32> to vector<1x2xf32>
    %231 = vector.shape_cast %230 : vector<1x2xf32> to vector<1x2x1xf32>
    %cst_81 = arith.constant dense<0.000000e+00> : vector<1x1xf32>
    %232 = vector.multi_reduction <add>, %231, %cst_81 [1] : vector<1x2x1xf32> to vector<1x1xf32>
    %233 = vector.shape_cast %232 : vector<1x1xf32> to vector<1x1x1xf32>
    %cst_82 = arith.constant 1.562500e-02 : f32
    %234 = vector.broadcast %cst_82 : f32 to vector<1x1x1xf32>
    %235 = arith.mulf %233, %234 : vector<1x1x1xf32>
    %cst_83 = arith.constant 9.99999974E-6 : f32
    %236 = vector.broadcast %cst_83 : f32 to vector<1x1x1xf32>
    %237 = arith.addf %235, %236 : vector<1x1x1xf32>
    %238 = math.rsqrt %237 : vector<1x1x1xf32>
    %239 = vector.broadcast %238 : vector<1x1x1xf32> to vector<1x2x32xf32>
    %240 = arith.mulf %228, %239 : vector<1x2x32xf32>
    %241 = vector.shape_cast %6 : vector<1x32xf32> to vector<1x1x32xf32>
    %242 = vector.broadcast %241 : vector<1x1x32xf32> to vector<1x2x32xf32>
    %243 = arith.mulf %240, %242 : vector<1x2x32xf32>
    %cst_84 = arith.constant dense<0.000000e+00> : vector<1x2xf32>
    %244 = vector.multi_reduction <add>, %243, %cst_84 [2] : vector<1x2x32xf32> to vector<1x2xf32>
    %245 = vector.shape_cast %244 : vector<1x2xf32> to vector<1x2x1xf32>
    %cst_85 = arith.constant 0.176776692 : f32
    %246 = vector.broadcast %cst_85 : f32 to vector<1x2x1xf32>
    %247 = arith.mulf %245, %246 : vector<1x2x1xf32>
    %cst_86 = arith.constant dense<0xFF800000> : vector<1x1xf32>
    %248 = vector.multi_reduction <maximumf>, %247, %cst_86 [1] : vector<1x2x1xf32> to vector<1x1xf32>
    %249 = vector.shape_cast %248 : vector<1x1xf32> to vector<1x1x1xf32>
    %250 = vector.broadcast %249 : vector<1x1x1xf32> to vector<1x2x1xf32>
    %251 = arith.subf %247, %250 : vector<1x2x1xf32>
    %252 = math.exp %251 : vector<1x2x1xf32>
    %cst_87 = arith.constant dense<0.000000e+00> : vector<1x1xf32>
    %253 = vector.multi_reduction <add>, %252, %cst_87 [1] : vector<1x2x1xf32> to vector<1x1xf32>
    %254 = vector.shape_cast %253 : vector<1x1xf32> to vector<1x1x1xf32>
    %255 = tpu.reciprocal %254 {approx = true} : vector<1x1x1xf32> -> vector<1x1x1xf32>
    %256 = vector.broadcast %255 : vector<1x1x1xf32> to vector<1x2x1xf32>
    %257 = arith.mulf %252, %256 : vector<1x2x1xf32>
    %258 = vector.broadcast %257 : vector<1x2x1xf32> to vector<1x2x32xf32>
    %259 = arith.mulf %240, %258 : vector<1x2x32xf32>
    %cst_88 = arith.constant dense<0.000000e+00> : vector<1x32xf32>
    %260 = vector.multi_reduction <add>, %259, %cst_88 [1] : vector<1x2x32xf32> to vector<1x32xf32>
    %261 = arith.truncf %260 : vector<1x32xf32> to vector<1x32xbf16>
    %c0_89 = arith.constant 0 : index
    %c0_90 = arith.constant 0 : index
    %262 = vector.load %arg6[%c0_89, %c0_90] : memref<32x128xbf16, #tpu.memory_space<vmem>>, vector<32x128xbf16>
    %cst_91 = arith.constant dense<0.000000e+00> : vector<1x128xf32>
    %263 = tpu.matmul %261, %262, %cst_91 {dimension_numbers = #tpu.dot_dimension_numbers<[1], [0], [0], [1], [0, 0, 1, 1], [], []>} : vector<1x32xbf16>, vector<32x128xbf16>, vector<1x128xf32> -> vector<1x128xf32>
    %c0_92 = arith.constant 0 : index
    %c0_93 = arith.constant 0 : index
    %264 = vector.load %arg7[%c0_92, %c0_93] : memref<1x128xf32, #tpu.memory_space<vmem>>, vector<1x128xf32>
    %265 = arith.addf %263, %264 : vector<1x128xf32>
    %c0_94 = arith.constant 0 : index
    %c0_95 = arith.constant 0 : index
    %266 = vector.load %arg8[%c0_94, %c0_95] : memref<1x128xf32, #tpu.memory_space<vmem>>, vector<1x128xf32>
    tpu.vector_store %arg8[%c0_94, %c0_95], %265 {strides = array<i32>} : memref<1x128xf32, #tpu.memory_space<vmem>>, vector<1x128xf32>,
    return
  }
}

</mosaic_0001>

<bundles_post_ra>
// kernel: hmcan_predict.1
= control target key start
LH: loop header
LB: loop body
LE: loop exit
PB: predicated region body
PF: predicated region fallthrough
CT: control target
= control target key end

     0   :  { %v49_v1 = vlaneseq  ;;  %vm168_vm2 = vcmask 261120   ;;  %s1837_s0 = inlined_call_operand.vmem [shape: f32[2,16,32], index: 0, kind: input, shape index: {}]   ;;  %s1838_s1 = inlined_call_operand.vmem [shape: bf16[32,32], index: 1, kind: input, shape index: {}]   ;;  %s1839_s2 = inlined_call_operand.vmem [shape: bf16[32,32], index: 2, kind: input, shape index: {}]   ;;  %s1840_s3 = inlined_call_operand.vmem [shape: bf16[32,32], index: 3, kind: input, shape index: {}]   ;;  %s1841_s4 = inlined_call_operand.vmem [shape: f32[1,32], index: 4, kind: input, shape index: {}]   ;;  %s1842_s5 = inlined_call_operand.vmem [shape: f32[1,32], index: 5, kind: input, shape index: {}]   ;;  %s1843_s6 = inlined_call_operand.vmem [shape: bf16[32,128], index: 6, kind: input, shape index: {}]   ;;  %s1844_s7 = inlined_call_operand.vmem [shape: f32[1,128], index: 7, kind: input, shape index: {}]   ;;  %s1845_s8 = inlined_call_operand.hbm [shape: f32[1,128], index: 8, kind: output, shape index: {}]  }
   0x1   :  { %v1509_v0 = vld [vmem:[%s1838_s1] sm:$0xff]   ;;  %v1514_v2 = vld [vmem:[%s1838_s1 + $0x8] sm:$0xff]   ;;  %v1530_v5 = vld [vmem:[%s1837_s0 + $0x18] sm:$0xff] }
   0x2   :  { %1281 = vmatprep.subr.bf16.mxu0 %v1509_v0  ;;  %v1520_v3 = vld [vmem:[%s1837_s0] sm:$0xff]  ;;  %v1525_v4 = vld [vmem:[%s1837_s0 + $0x8] sm:$0xff]  ;;  %v1532_v6 = vshrl.u32 %v49_v1, 7  ;;  %1305 = vmatprep.subr.bf16.mxu1 %v1509_v0  ;;  %v113_v9 = vrot.slane %v1530_v5, 7  ;;  %v1551_v12 = vld [vmem:[%s1837_s0 + $0x10] sm:$0xff] }
   0x3   :  { %1282 = vmatpush3.bf16.msra.mxu0 %v1509_v0  ;;  %v110_v7 = vrot.slane %v1520_v3, 7  ;;  %v111_v8 = vrot.slane %v1525_v4, 7  ;;  %1306 = vmatpush3.bf16.msra.mxu1 %v1509_v0  ;;  %v1546_v11 = vld [vmem:[%s1839_s2] sm:$0xff]   ;;  %v112_v16 = vrot.slane %v1551_v12, 7  ;;  %v152_v26 = vpack.c.bf16 %v1525_v4, %v1520_v3  ;;  %v1587_v28 = vld [vmem:[%s1839_s2 + $0x8] sm:$0xff]  }
   0x4   :  { %1283 = vmatprep.subr.bf16.mxu0 %v1514_v2  ;;  %v58_v10 = vand.u32 15, %v1532_v6  ;;  %vm114_vm0 = vcmp.lt.s32.totalorder %v1532_v6, 1  ;;  %1307 = vmatprep.subr.bf16.mxu1 %v1514_v2  ;;  %v52_v15 = vadd.s32 16, %v1532_v6  ;;  %v51_v23 = vadd.s32 8, %v1532_v6 }
   0x5   :  { %v117_v13 = vsel %vm114_vm0, %v110_v7, %v111_v8  ;;  %v118_v14 = vsel %vm114_vm0, %v113_v9, %v110_v7  ;;  %v116_v20 = vsel %vm114_vm0, %v111_v8, %v112_v16  ;;  %v115_v22 = vsel %vm114_vm0, %v112_v16, %v113_v9 }
   0x6   :  { %vm1560_vm1 = vcmp.ne.s32.totalorder %v58_v10, 0  ;;  %v72_v19 = vand.u32 15, %v52_v15  ;;  %v65_v29 = vand.u32 15, %v51_v23  ;;  %v132_v30 = vrot.slane %v1525_v4, 1 }
   0x7   :  { %1284 = vmatpush3.bf16.msra.mxu0 %v1514_v2  ;;  %v127_v18 = vsel %vm1560_vm1, %v118_v14, 0.0  ;;  %1308 = vmatpush3.bf16.msra.mxu1 %v1514_v2  ;;  %v133_v31 = vrot.slane %v1551_v12, 1 }
   0x8   :  { %v154_v21 = vpack.c.bf16 %v117_v13, %v127_v18  ;;  %1289 = vmatprep.subr.bf16.mxu0 %v1546_v11  ;;  %1313 = vmatprep.subr.bf16.mxu1 %v1546_v11  ;;  %vm1575_vm3 = vcmp.ne.s32.totalorder %v72_v19, 0 }
   0x9   :  { %v129_v25 = vsel %vm1575_vm3, %v116_v20, 0.0 }
   0xa   :  { %1285 = vmatprep.mubr.msk.bf16.mxu0 %vm168_vm2, %v154_v21  ;;  %v155_v27 = vpack.c.bf16 %v115_v22, %v129_v25 }
   0xb   :  { %13 = vsyncpa [#allocation3], 0  ;;  %vm135_vm4 = vcmp.lt.s32.totalorder %v1532_v6, 7  ;;  %v1599_v32 = vld [vmem:[%s1840_s3] sm:$0xff]   ;;  %v131_v33 = vrot.slane %v1520_v3, 1  ;;  %vm1602_vm5 = vcmp.ne.s32.totalorder %v65_v29, 15  ;;  %v153_v39 = vpack.c.bf16 %v1530_v5, %v1551_v12 }
   0xc   :  { %1286 = vmatmul.mubr.msk.bf16.vlgmr.msra.gmra.mrb[0].mxu0 %vm168_vm2, %v155_v27  ;;  %v137_v35 = vsel %vm135_vm4, %v132_v30, %v133_v31  ;;  %v53_v38 = vadd.s32 24, %v1532_v6  ;;  %v134_v41 = vrot.slane %v1530_v5, 1  ;;  %v1621_v42 = vld [vmem:[%s1840_s3 + $0x8] sm:$0xff]   ;;  %v1642_v49 = vld [vmem:[%s1841_s4] ss:$0 sm:$0xff]  ;;  %vm1459_vm7 = vmmov 0  }
   0xd   :  { %1290 = vmatpush3.bf16.msra.mxu0 %v1546_v11  ;;  %1293 = vmatprep.mubr.msk.bf16.mxu0 %vm168_vm2, %v152_v26  ;;  %v138_v36 = vsel %vm135_vm4, %v131_v33, %v132_v30  ;;  %v149_v37 = vsel %vm1602_vm5, %v137_v35, 0.0  ;;  %vm769_vm8 = vcmask 1040384   ;;  %vm828_vm10 = vcmask 1041409   ;;  %s1460_s28 = smov [#allocation2]  }
   0xe   :  { %1291 = vmatprep.subr.bf16.mxu0 %v1587_v28  ;;  %v291_v40 = vpack.c.bf16 %v149_v37, %v138_v36  ;;  %v79_v43 = vand.u32 15, %v53_v38  ;;  %v139_v45 = vsel %vm135_vm4, %v134_v41, %v131_v33  ;;  %v136_v46 = vsel %vm135_vm4, %v133_v31, %v134_v41  ;;  %s1199_s29 = sshll.u32 %s1460_s28, 4  ;;  %s1200_s29 = int_to_ptr.vmem [resolvable:$true] %s1199_s29 }
   0xf   :  { %vm1070_vm12 = vcmask 254976   ;;  %vm1074_vm13 = vcmask 1041408   ;;  %s1434_s30 = scalar_lea.vmem %s1200_s29, 16  ;;  %s1438_s9 = scalar_lea.vmem %s1200_s29, 32 }
  0x10   :  { %vm1627_vm6 = vcmp.ne.s32.totalorder %v79_v43, 15  ;;  %p1435_p0 = scmp.ne.s32.totalorder %s1200_s29, %s1434_s30  ;;  %p1439_p1 = scmp.lt.s32.totalorder %s1200_s29, %s1200_s29 }
  0x11   :  { %1292 = vmatpush3.bf16.msra.mxu0 %v1587_v28  ;;  %v151_v47 = vsel %vm1627_vm6, %v139_v45, 0.0  ;;  %p1440_p2 = scmp.lt.s32.totalorder %s1438_s9, %s1434_s30 }
  0x12   :  { %1297 = vmatprep.subr.bf16.mxu0 %v1599_v32  ;;  %v292_v48 = vpack.c.bf16 %v151_v47, %v136_v46 }
  0x13   :  { %p1441_p3 = por %p1440_p2, %p1439_p1 }
  0x15   :  { %p1442_p4 = pnand %p1441_p3, %p1435_p0 }
  0x18   :  { %1294 = vmatmul.mubr.msk.bf16.vlgmr.msra.gmra.mrb[0].mxu0 %vm168_vm2, %v153_v39 }
  0x19   :  { %1298 = vmatpush3.bf16.msra.mxu0 %v1599_v32  ;;  %1301 = vmatprep.mubr.msk.bf16.mxu0 %vm168_vm2, %v291_v40 }
  0x1a   :  { %1299 = vmatprep.subr.bf16.mxu0 %v1621_v42 }
  0x1d   :  { %1300 = vmatpush3.bf16.msra.mxu0 %v1621_v42 }
  0x24   :  { %1302 = vmatmul.mubr.msk.bf16.vlgmr.msra.gmra.mrb[0].mxu0 %vm168_vm2, %v292_v48 }
  0xf7   :  { %v1303_v50 = vpop.f32.mrb[0].mxu0 }
  0xf8   :  { %v372_v51 = vadd.f32 %v1303_v50, %v1642_v49  ;;  %v345_v52 = vpop.f32.mrb[1].mxu0 }
  0xf9   :  { %v370_v53 = vadd.f32 %v1642_v49, %v345_v52  ;;  %v1304_v54 = vpop.f32.mrb[2].mxu0 }
  0xfa   :  { %v376_v55 = vmax.f32 %v372_v51, 0.0  ;;  %v373_v56 = vadd.f32 %v1304_v54, %v1642_v49  ;;  %v348_v57 = vpop.f32.mrb[3].mxu0 }
  0xfb   :  { %v374_v58 = vmax.f32 %v370_v53, 0.0  ;;  %v371_v59 = vadd.f32 %v1642_v49, %v348_v57 }
  0xfc   :  { %v377_v60 = vmax.f32 %v373_v56, 0.0  ;;  %v380_v61 = vrot.slane %v376_v55, 7  ;;  %v392_v7 = vrot.slane %v376_v55, 1 }
  0xfd   :  { %v378_v62 = vrot.slane %v374_v58, 7  ;;  %v390_v63 = vrot.slane %v374_v58, 1  ;;  %v375_v1 = vmax.f32 %v371_v59, 0.0 }
  0xfe   :  { %v381_v8 = vrot.slane %v377_v60, 7  ;;  %v393_v9 = vrot.slane %v377_v60, 1  ;;  %v403_v10 = vpack.c.bf16 %v377_v60, %v376_v55 }
  0xff   :  { %v379_v13 = vrot.slane %v375_v1, 7  ;;  %v391_v14 = vrot.slane %v375_v1, 1  ;;  %v402_v15 = vpack.c.bf16 %v375_v1, %v374_v58 }
 0x100   :  { %v394_v16 = vsel %vm135_vm4, %v392_v7, %v393_v9  ;;  %v397_v18 = vsel %vm135_vm4, %v393_v9, %v390_v63  ;;  %v385_v19 = vsel %vm114_vm0, %v381_v8, %v378_v62  ;;  %v382_v20 = vsel %vm114_vm0, %v380_v61, %v381_v8 }
 0x101   :  { %v401_v21 = vsel %vm1627_vm6, %v397_v18, 0.0  ;;  %v384_v22 = vsel %vm114_vm0, %v378_v62, %v379_v13  ;;  %v386_v23 = vsel %vm1560_vm1, %v385_v19, 0.0  ;;  %v383_v25 = vsel %vm114_vm0, %v379_v13, %v380_v61 }
 0x102   :  { %v517_v26 = vpack.c.bf16 %v401_v21, %v394_v16  ;;  %v404_v27 = vpack.c.bf16 %v384_v22, %v386_v23  ;;  %v388_v29 = vsel %vm1575_vm3, %v383_v25, 0.0  ;;  %v395_v30 = vsel %vm135_vm4, %v391_v14, %v392_v7 }
 0x103   :  { %v405_v31 = vpack.c.bf16 %v382_v20, %v388_v29  ;;  %v396_v33 = vsel %vm135_vm4, %v390_v63, %v391_v14  ;;  %v399_v35 = vsel %vm1602_vm5, %v395_v30, 0.0 }
 0x104   :  { %1309 = vmatprep.mubr.msk.bf16.mxu1 %vm168_vm2, %v404_v27  ;;  %v516_v17 = vpack.c.bf16 %v399_v35, %v396_v33 }
 0x105   :  { %1310 = vmatmul.mubr.msk.bf16.vlgmr.msra.gmra.mrb[0].mxu1 %vm168_vm2, %v405_v31 }
 0x106   :  { %1314 = vmatpush3.bf16.msra.mxu1 %v1546_v11  ;;  %1317 = vmatprep.mubr.msk.bf16.mxu1 %vm168_vm2, %v402_v15 }
 0x107   :  { %1315 = vmatprep.subr.bf16.mxu1 %v1587_v28 }
 0x10a   :  { %1316 = vmatpush3.bf16.msra.mxu1 %v1587_v28 }
 0x10b   :  { %1321 = vmatprep.subr.bf16.mxu1 %v1599_v32 }
 0x111   :  { %1318 = vmatmul.mubr.msk.bf16.vlgmr.msra.gmra.mrb[0].mxu1 %vm168_vm2, %v403_v10 }
 0x112   :  { %1322 = vmatpush3.bf16.msra.mxu1 %v1599_v32  ;;  %1325 = vmatprep.mubr.msk.bf16.mxu1 %vm168_vm2, %v516_v17 }
 0x113   :  { %1323 = vmatprep.subr.bf16.mxu1 %v1621_v42 }
 0x116   :  { %1324 = vmatpush3.bf16.msra.mxu1 %v1621_v42 }
 0x11d   :  { %1326 = vmatmul.mubr.msk.bf16.vlgmr.msra.gmra.mrb[0].mxu1 %vm168_vm2, %v517_v26 }
 0x1f0   :  { %v1327_v24 = vpop.f32.mrb[0].mxu1 }
 0x1f1   :  { %v579_v34 = vadd.f32 %v1327_v24, %v1642_v49  ;;  %v558_v36 = vpop.f32.mrb[1].mxu1 }
 0x1f2   :  { %v577_v37 = vadd.f32 %v1642_v49, %v558_v36  ;;  %v1328_v38 = vpop.f32.mrb[2].mxu1 }
 0x1f3   :  { %v580_v39 = vadd.f32 %v1328_v38, %v1642_v49  ;;  %v561_v40 = vpop.f32.mrb[3].mxu1  ;;  %v583_v41 = vadd.f32 %v579_v34, %v1551_v12 }
 0x1f4   :  { %v578_v43 = vadd.f32 %v1642_v49, %v561_v40  ;;  %v581_v44 = vadd.f32 %v577_v37, %v1520_v3 }
 0x1f5   :  { %v584_v45 = vadd.f32 %v580_v39, %v1530_v5  ;;  %v587_v46 = vmax.f32 %v583_v41, 0.0 }
 0x1f6   :  { %v582_v47 = vadd.f32 %v578_v43, %v1525_v4  ;;  %v585_v48 = vmax.f32 %v581_v44, 0.0 }
 0x1f7   :  { %v595_v50 = vsel %vm168_vm2, %v587_v46, 0.0  ;;  %v588_v51 = vmax.f32 %v584_v45, 0.0 }
 0x1f8   :  { %596 = vadd.xlane.f32.xlu1 %v595_v50  ;;  %v589_v52 = vsel %vm168_vm2, %v585_v48, 0.0  ;;  %v586_v53 = vmax.f32 %v582_v47, 0.0 }
 0x1f9   :  { %590 = vadd.xlane.f32.xlu0 %v589_v52  ;;  %v598_v12 = vsel %vm168_vm2, %v588_v51, 0.0 }
 0x1fa   :  { %v592_v54 = vsel %vm168_vm2, %v586_v53, 0.0 }
 0x1fc   :  { %599 = vadd.xlane.f32.xlu1 %v598_v12 }
 0x1fd   :  { %593 = vadd.xlane.f32.xlu0 %v592_v54  ;;  %v1704_v54 = vld [vmem:[%s1842_s5] ss:$0 sm:$0xff] }
 0x285   :  { %v597_v3 = vpop.xlane.xlu1 %596 }
 0x286   :  { %v591_v5 = vpop.xlane.xlu0 %590 }
 0x289   :  { %v600_v55 = vpop.xlane.xlu1 %599 }
 0x28a   :  { %v608_v56 = vadd.f32 %v600_v55, %v597_v3  ;;  %v594_v4 = vpop.xlane.xlu0 %593 }
 0x28b   :  { %v601_v57 = vadd.f32 %v594_v4, %v591_v5 }
 0x28c   :  { %v609_v58 = vrot.slane %v608_v56, 4 }
 0x28d   :  { %v602_v59 = vrot.slane %v601_v57, 4 }
 0x28e   :  { %v610_v60 = vadd.f32 %v609_v58, %v608_v56 }
 0x28f   :  { %v603_v61 = vadd.f32 %v602_v59, %v601_v57 }
 0x290   :  { %v611_v62 = vrot.slane %v610_v60, 2 }
 0x291   :  { %v604_v63 = vrot.slane %v603_v61, 2 }
 0x292   :  { %v612_v1 = vadd.f32 %v611_v62, %v610_v60 }
 0x293   :  { %v605_v7 = vadd.f32 %v604_v63, %v603_v61 }
 0x294   :  { %v613_v8 = vrot.slane %v612_v1, 1 }
 0x295   :  { %v606_v9 = vrot.slane %v605_v7, 1 }
 0x296   :  { %v614_v10 = vadd.f32 %v613_v8, %v612_v1 }
 0x297   :  { %v607_v13 = vadd.f32 %v606_v9, %v605_v7  ;;  %v1458_v7 = vmov 0.0  }
 0x298   :  { %v616_v14 = vmul.f32 0.001953125, %v614_v10  ;;  %1329 = vmatprep.subr.bf16.mxu0 %v1458_v7  ;;  %1337 = vmatprep.subr.bf16.mxu1 %v1458_v7 }
 0x299   :  { %v615_v15 = vmul.f32 0.001953125, %v607_v13  ;;  %1330 = vmatpush3.bf16.msra.mxu0 %v1509_v0  ;;  %1338 = vmatpush3.bf16.msra.mxu1 %v1546_v11 }
 0x29a   :  { %v620_v19 = vsub.f32 %v588_v51, %v616_v14  ;;  %v619_v20 = vsub.f32 %v587_v46, %v616_v14  ;;  %1331 = vmatprep.subr.bf16.mxu0 %v1458_v7  ;;  %1333 = vmatprep.mubr.msk.bf16.mxu0 %vm1459_vm7, %v1458_v7 }
 0x29b   :  { %v618_v16 = vsub.f32 %v586_v53, %v615_v15  ;;  %v617_v18 = vsub.f32 %v585_v48, %v615_v15  ;;  %1339 = vmatprep.subr.bf16.mxu1 %v1458_v7  ;;  %1341 = vmatprep.mubr.msk.bf16.mxu1 %vm1459_vm7, %v1458_v7 }
 0x29c   :  { %v624_v26 = vmul.f32 %v620_v19, %v620_v19  ;;  %v623_v27 = vmul.f32 %v619_v20, %v619_v20 }
 0x29d   :  { %v622_v21 = vmul.f32 %v618_v16, %v618_v16  ;;  %v621_v22 = vmul.f32 %v617_v18, %v617_v18  ;;  %1332 = vmatpush3.bf16.msra.mxu0 %v1514_v2  ;;  %1340 = vmatpush3.bf16.msra.mxu1 %v1587_v28 }
 0x29e   :  { %v634_v29 = vsel %vm168_vm2, %v624_v26, 0.0  ;;  %v631_v30 = vsel %vm168_vm2, %v623_v27, 0.0  ;;  %1345 = vmatprep.subr.bf16.mxu0 %v1458_v7  ;;  %1353 = vmatprep.subr.bf16.mxu1 %v1458_v7 }
 0x29f   :  { %v628_v23 = vsel %vm168_vm2, %v622_v21, 0.0  ;;  %v625_v25 = vsel %vm168_vm2, %v621_v22, 0.0 }
 0x2a0   :  { %629 = vadd.xlane.f32.xlu1 %v628_v23  ;;  %626 = vadd.xlane.f32.xlu0 %v625_v25 }
 0x2a4   :  { %635 = vadd.xlane.f32.xlu1 %v634_v29  ;;  %632 = vadd.xlane.f32.xlu0 %v631_v30 }
 0x32d   :  { %v630_v31 = vpop.xlane.xlu1 %629  ;;  %v627_v33 = vpop.xlane.xlu0 %626 }
 0x32e   :  { %v637_v35 = vadd.f32 %v630_v31, %v627_v33 }
 0x330   :  { %v638_v17 = vrot.slane %v637_v35, 4 }
 0x331   :  { %v636_v24 = vpop.xlane.xlu1 %635  ;;  %v633_v34 = vpop.xlane.xlu0 %632 }
 0x332   :  { %v639_v36 = vadd.f32 %v638_v17, %v637_v35  ;;  %v644_v37 = vadd.f32 %v636_v24, %v633_v34 }
 0x334   :  { %v640_v38 = vrot.slane %v639_v36, 2  ;;  %v645_v39 = vrot.slane %v644_v37, 4 }
 0x336   :  { %v641_v40 = vadd.f32 %v640_v38, %v639_v36  ;;  %v646_v41 = vadd.f32 %v645_v39, %v644_v37 }
 0x338   :  { %v642_v43 = vrot.slane %v641_v40, 1  ;;  %v647_v44 = vrot.slane %v646_v41, 2 }
 0x33a   :  { %v643_v45 = vadd.f32 %v642_v43, %v641_v40  ;;  %v648_v46 = vadd.f32 %v647_v44, %v646_v41 }
 0x33c   :  { %v651_v47 = vmul.f32 0.001953125, %v643_v45  ;;  %v649_v48 = vrot.slane %v648_v46, 1 }
 0x33e   :  { %v653_v50 = vadd.f32 1e-05, %v651_v47  ;;  %v650_v51 = vadd.f32 %v649_v48, %v648_v46 }
 0x340   :  { %1412 = vrsqrt.f32 %v653_v50  ;;  %v652_v52 = vmul.f32 0.001953125, %v650_v51 }
 0x342   :  { %v654_v53 = vadd.f32 1e-05, %v652_v52 }
 0x344   :  { %1414 = vrsqrt.f32 %v654_v53 }
 0x34a   :  { %v1413_v12 = vpop.eup %1412 }
 0x34b   :  { %v1706_v3 = vmul.f32 %v1413_v12, %v618_v16  ;;  %v1708_v5 = vmul.f32 %v1413_v12, %v617_v18 }
 0x34d   :  { %v668_v55 = vmul.f32 %v1704_v54, %v1706_v3  ;;  %v667_v56 = vmul.f32 %v1704_v54, %v1708_v5 }
 0x34e   :  { %v1415_v4 = vpop.eup %1414 }
 0x34f   :  { %v674_v57 = vsel %vm168_vm2, %v668_v55, 0.0  ;;  %v671_v58 = vsel %vm168_vm2, %v667_v56, 0.0  ;;  %v1716_v59 = vmul.f32 %v1415_v4, %v620_v19  ;;  %v1718_v60 = vmul.f32 %v1415_v4, %v619_v20 }
 0x350   :  { %675 = vadd.xlane.f32.xlu1 %v674_v57  ;;  %672 = vadd.xlane.f32.xlu0 %v671_v58 }
 0x351   :  { %v670_v61 = vmul.f32 %v1704_v54, %v1716_v59  ;;  %v669_v62 = vmul.f32 %v1704_v54, %v1718_v60 }
 0x353   :  { %v680_v63 = vsel %vm168_vm2, %v670_v61, 0.0  ;;  %v677_v1 = vsel %vm168_vm2, %v669_v62, 0.0 }
 0x354   :  { %681 = vadd.xlane.f32.xlu1 %v680_v63  ;;  %678 = vadd.xlane.f32.xlu0 %v677_v1 }
 0x3dd   :  { %v676_v8 = vpop.xlane.xlu1 %675  ;;  %v673_v9 = vpop.xlane.xlu0 %672 }
 0x3de   :  { %v684_v10 = vmul.f32 0.17677669, %v676_v8  ;;  %v683_v13 = vmul.f32 0.17677669, %v673_v9 }
 0x3e0   :  { %v687_v14 = vmax.f32 %v683_v13, %v684_v10 }
 0x3e1   :  { %v682_v15 = vpop.xlane.xlu1 %681  ;;  %v679_v16 = vpop.xlane.xlu0 %678 }
 0x3e2   :  { %v688_v18 = vrot.slane %v687_v14, 4  ;;  %v686_v19 = vmul.f32 0.17677669, %v682_v15  ;;  %v685_v20 = vmul.f32 0.17677669, %v679_v16 }
 0x3e4   :  { %v689_v21 = vmax.f32 %v687_v14, %v688_v18  ;;  %v694_v22 = vmax.f32 %v685_v20, %v686_v19 }
 0x3e6   :  { %v690_v23 = vrot.slane %v689_v21, 2  ;;  %v695_v25 = vrot.slane %v694_v22, 4 }
 0x3e8   :  { %v691_v26 = vmax.f32 %v689_v21, %v690_v23  ;;  %v696_v27 = vmax.f32 %v694_v22, %v695_v25 }
 0x3ea   :  { %v692_v29 = vrot.slane %v691_v26, 1  ;;  %v697_v30 = vrot.slane %v696_v27, 2 }
 0x3ec   :  { %v693_v31 = vmax.f32 %v691_v26, %v692_v29  ;;  %v698_v33 = vmax.f32 %v696_v27, %v697_v30 }
 0x3ee   :  { %v701_v35 = vsub.f32 %v683_v13, %v693_v31  ;;  %v702_v17 = vsub.f32 %v684_v10, %v693_v31  ;;  %v699_v24 = vrot.slane %v698_v33, 1  ;;  %v759_v31 = vand.u32 1, %v1532_v6 }
 0x3f0   :  { %v705_v34 = vmul.f32 1.442695, %v701_v35  ;;  %v707_v36 = vmul.f32 1.442695, %v702_v17  ;;  %v700_v37 = vmax.f32 %v698_v33, %v699_v24  ;;  %vm1749_vm9 = vcmp.ne.s32.totalorder %v759_v31, 0 }
 0x3f1   :  { %vm1757_vm11 = vcmp.ne.s32.totalorder %v759_v31, 1 }
 0x3f2   :  { %1416 = vpow2.f32 %v705_v34  ;;  %v703_v38 = vsub.f32 %v685_v20, %v700_v37  ;;  %v704_v39 = vsub.f32 %v686_v19, %v700_v37 }
 0x3f3   :  { %1418 = vpow2.f32 %v707_v36 }
 0x3f4   :  { %v709_v40 = vmul.f32 1.442695, %v703_v38  ;;  %v711_v41 = vmul.f32 1.442695, %v704_v39 }
 0x3f6   :  { %1420 = vpow2.f32 %v709_v40 }
 0x3f7   :  { %1422 = vpow2.f32 %v711_v41 }
 0x3fc   :  { %v1417_v43 = vpop.eup %1416 }
 0x3fd   :  { %v1419_v44 = vpop.eup %1418 }
 0x3fe   :  { %v713_v45 = vadd.f32 %v1419_v44, %v1417_v43 }
 0x400   :  { %v1421_v46 = vpop.eup %1420  ;;  %v714_v47 = vrot.slane %v713_v45, 4 }
 0x401   :  { %v1423_v48 = vpop.eup %1422 }
 0x402   :  { %v715_v50 = vadd.f32 %v714_v47, %v713_v45  ;;  %v720_v51 = vadd.f32 %v1423_v48, %v1421_v46 }
 0x404   :  { %v716_v52 = vrot.slane %v715_v50, 2  ;;  %v721_v53 = vrot.slane %v720_v51, 4 }
 0x406   :  { %v717_v12 = vadd.f32 %v716_v52, %v715_v50  ;;  %v722_v55 = vadd.f32 %v721_v53, %v720_v51 }
 0x408   :  { %v718_v56 = vrot.slane %v717_v12, 1  ;;  %v723_v4 = vrot.slane %v722_v55, 2 }
 0x40a   :  { %v719_v57 = vadd.f32 %v718_v56, %v717_v12  ;;  %v724_v58 = vadd.f32 %v723_v4, %v722_v55 }
 0x40c   :  { %1424 = vrcp.f32 %v719_v57  ;;  %v725_v61 = vrot.slane %v724_v58, 1 }
 0x40e   :  { %v726_v62 = vadd.f32 %v725_v61, %v724_v58 }
 0x410   :  { %1426 = vrcp.f32 %v726_v62 }
 0x416   :  { %v1425_v63 = vpop.eup %1424 }
 0x417   :  { %v729_v1 = vmul.f32 %v1425_v63, %v1417_v43  ;;  %v730_v8 = vmul.f32 %v1425_v63, %v1419_v44 }
 0x419   :  { %v733_v9 = vmul.f32 %v729_v1, %v1708_v5  ;;  %v734_v10 = vmul.f32 %v730_v8, %v1706_v3 }
 0x41a   :  { %v1427_v13 = vpop.eup %1426 }
 0x41b   :  { %v737_v14 = vsel %vm168_vm2, %v733_v9, 0.0  ;;  %v738_v15 = vsel %vm168_vm2, %v734_v10, 0.0  ;;  %v731_v16 = vmul.f32 %v1427_v13, %v1421_v46  ;;  %v732_v18 = vmul.f32 %v1427_v13, %v1423_v48 }
 0x41c   :  { %v739_v19 = vadd.f32 %v738_v15, %v737_v14 }
 0x41d   :  { %v735_v20 = vmul.f32 %v731_v16, %v1718_v60  ;;  %v736_v21 = vmul.f32 %v732_v18, %v1716_v59 }
 0x41e   :  { %v740_v22 = vrot.slane %v739_v19, 4 }
 0x41f   :  { %v746_v23 = vsel %vm168_vm2, %v735_v20, 0.0  ;;  %v747_v25 = vsel %vm168_vm2, %v736_v21, 0.0 }
 0x420   :  { %v741_v5 = vadd.f32 %v740_v22, %v739_v19  ;;  %v748_v26 = vadd.f32 %v747_v25, %v746_v23 }
 0x422   :  { %v749_v3 = vrot.slane %v748_v26, 4  ;;  %v742_v27 = vrot.slane %v741_v5, 2 }
 0x424   :  { %v750_v29 = vadd.f32 %v749_v3, %v748_v26  ;;  %v743_v30 = vadd.f32 %v742_v27, %v741_v5 }
 0x426   :  { %v751_v33 = vrot.slane %v750_v29, 2  ;;  %v744_v35 = vrot.slane %v743_v30, 1 }
 0x428   :  { %v752_v17 = vadd.f32 %v751_v33, %v750_v29  ;;  %v745_v60 = vadd.f32 %v744_v35, %v743_v30 }
 0x42a   :  { %v770_v24 = vsel %vm769_vm8, 0.0, %v745_v60  ;;  %v753_v34 = vrot.slane %v752_v17, 1  ;;  %v778_v39 = vpack.c.bf16 %v745_v60, %v745_v60 }
 0x42b   :  { %v773_v36 = vsel %vm1749_vm9, %v770_v24, 0.0 }
 0x42c   :  { %v780_v37 = vpack.c.bf16 %v773_v36, %v773_v36  ;;  %v754_v38 = vadd.f32 %v753_v34, %v752_v17  ;;  %v826_v44 = vunpack.c.l.b16 %v778_v39 }
 0x42e   :  { %1334 = vmatmul.mubr.msk.bf16.vlgmr.msra.gmra.mrb[4].mxu0 %vm168_vm2, %v780_v37  ;;  %v779_v6 = vpack.c.bf16 %v754_v38, %v754_v38  ;;  %v774_v41 = vsel %vm769_vm8, %v754_v38, 0.0  ;;  %v1762_v43 = vsel %vm828_vm10, %v754_v38, %v745_v60 }
 0x42f   :  { %1346 = vmatpush3.bf16.msra.mxu0 %v1599_v32  ;;  %1349 = vmatprep.mubr.msk.bf16.mxu0 %vm1459_vm7, %v1458_v7  ;;  %v777_v46 = vsel %vm1757_vm11, %v774_v41, 0.0 }
 0x430   :  { %1347 = vmatprep.subr.bf16.mxu0 %v1458_v7  ;;  %v827_v45 = vunpack.c.l.b16 %v779_v6  ;;  %v874_v50 = vpack.c.bf16 %v777_v46, %v777_v46 }
 0x432   :  { %v829_v47 = vsel %vm828_vm10, %v827_v45, %v826_v44 }
 0x433   :  { %1348 = vmatpush3.bf16.msra.mxu0 %v1621_v42  ;;  %v830_v48 = vpack.c.b16 %v829_v47, %v829_v47 }
 0x434   :  { %1361 = vmatprep.subr.bf16.mxu0 %v1458_v7 }
 0x435   :  { %1342 = vmatmul.mubr.msk.bf16.vlgmr.msra.gmra.mrb[4].mxu1 %vm168_vm2, %v830_v48 }
 0x436   :  { %1350 = vmatmul.mubr.msk.bf16.vlgmr.msra.gmra.mrb[8].mxu0 %vm168_vm2, %v874_v50  ;;  %1354 = vmatpush3.bf16.msra.mxu1 %v1509_v0 }
 0x437   :  { %1362 = vmatpush3.bf16.msra.mxu0 %v1546_v11  ;;  %1355 = vmatprep.subr.bf16.mxu1 %v1458_v7 }
 0x438   :  { %1363 = vmatprep.subr.bf16.mxu0 %v1458_v7  ;;  %1365 = vmatprep.mubr.msk.bf16.mxu0 %vm1459_vm7, %v1458_v7 }
 0x439   :  { %1357 = vmatprep.mubr.msk.bf16.mxu1 %vm1459_vm7, %v1458_v7 }
 0x43a   :  { %1356 = vmatpush3.bf16.msra.mxu1 %v1514_v2 }
 0x43b   :  { %1364 = vmatpush3.bf16.msra.mxu0 %v1587_v28  ;;  %1369 = vmatprep.subr.bf16.mxu1 %v1458_v7 }
 0x43c   :  { %1377 = vmatprep.subr.bf16.mxu0 %v1458_v7 }
 0x501   :  { %v818_v0 = vpop.f32.mrb[4].mxu0 }
 0x502   :  { %v1335_v11 = vpop.f32.mrb[5].mxu0 }
 0x503   :  { %v821_v51 = vpop.f32.mrb[6].mxu0 }
 0x504   :  { %v1336_v52 = vpop.f32.mrb[7].mxu0 }
 0x508   :  { %v868_v53 = vpop.f32.mrb[4].mxu1 }
 0x509   :  { %v869_v12 = vadd.f32 %v868_v53, %v818_v0  ;;  %v1343_v55 = vpop.f32.mrb[5].mxu1  ;;  %v912_v56 = vpop.f32.mrb[8].mxu0 }
 0x50a   :  { %v871_v4 = vpop.f32.mrb[6].mxu1  ;;  %v1351_v57 = vpop.f32.mrb[9].mxu0 }
 0x50b   :  { %v918_v58 = vadd.f32 %v912_v56, %v869_v12  ;;  %v1344_v61 = vpop.f32.mrb[7].mxu1  ;;  %v915_v62 = vpop.f32.mrb[10].mxu0  ;;  %v1410_v56 = vld [vmem:[%s1843_s6] sm:$0xff]   ;;  %v1411_v4 = vld [vmem:[%s1843_s6 + $0x8] sm:$0xff]  }
 0x50c   :  { %v1352_v2 = vpop.f32.mrb[11].mxu0 }
 0x50d   :  { %v919_v28 = vadd.f32 %v1642_v49, %v918_v58 }
 0x50f   :  { %v920_v63 = vmax.f32 %v919_v28, 0.0 }
 0x511   :  { %v922_v1 = vrot.slane %v920_v63, 7  ;;  %v930_v8 = vpack.c.bf16 %v920_v63, %v920_v63  ;;  %v926_v10 = vrot.slane %v920_v63, 1 }
 0x513   :  { %v924_v9 = vsel %vm769_vm8, 0.0, %v922_v1  ;;  %1366 = vmatmul.mubr.msk.bf16.vlgmr.msra.gmra.mrb[12].mxu0 %vm168_vm2, %v930_v8  ;;  %v928_v15 = vsel %vm769_vm8, %v926_v10, 0.0 }
 0x514   :  { %v925_v13 = vsel %vm1749_vm9, %v924_v9, 0.0  ;;  %1381 = vmatprep.mubr.msk.bf16.mxu0 %vm1459_vm7, %v1458_v7  ;;  %v929_v16 = vsel %vm1757_vm11, %v928_v15, 0.0  ;;  %1378 = vmatpush3.bf16.msra.mxu0 %v1410_v56 }
 0x515   :  { %v931_v14 = vpack.c.bf16 %v925_v13, %v925_v13  ;;  %v1018_v18 = vpack.c.bf16 %v929_v16, %v929_v16  ;;  %1379 = vmatprep.subr.bf16.mxu0 %v1458_v7 }
 0x517   :  { %1358 = vmatmul.mubr.msk.bf16.vlgmr.msra.gmra.mrb[8].mxu1 %vm168_vm2, %v931_v14 }
 0x518   :  { %1370 = vmatpush3.bf16.msra.mxu1 %v1599_v32  ;;  %1373 = vmatprep.mubr.msk.bf16.mxu1 %vm1459_vm7, %v1458_v7 }
 0x519   :  { %1371 = vmatprep.subr.bf16.mxu1 %v1458_v7  ;;  %1380 = vmatpush3.bf16.msra.mxu0 %v1411_v4 }
 0x51c   :  { %1372 = vmatpush3.bf16.msra.mxu1 %v1621_v42 }
 0x51f   :  { %1374 = vmatmul.mubr.msk.bf16.vlgmr.msra.gmra.mrb[12].mxu1 %vm168_vm2, %v1018_v18 }
 0x5e6   :  { %v1012_v19 = vpop.f32.mrb[12].mxu0 }
 0x5e7   :  { %v1367_v20 = vpop.f32.mrb[13].mxu0 }
 0x5e8   :  { %v1015_v21 = vpop.f32.mrb[14].mxu0 }
 0x5e9   :  { %v1368_v22 = vpop.f32.mrb[15].mxu0 }
 0x5ea   :  { %v969_v23 = vpop.f32.mrb[8].mxu1 }
 0x5eb   :  { %v1013_v25 = vadd.f32 %v1012_v19, %v969_v23  ;;  %v1359_v32 = vpop.f32.mrb[9].mxu1 }
 0x5ec   :  { %v972_v5 = vpop.f32.mrb[10].mxu1 }
 0x5ed   :  { %v1360_v26 = vpop.f32.mrb[11].mxu1 }
 0x5f2   :  { %v1056_v3 = vpop.f32.mrb[12].mxu1 }
 0x5f3   :  { %v1062_v27 = vadd.f32 %v1056_v3, %v1013_v25  ;;  %v1375_v29 = vpop.f32.mrb[13].mxu1 }
 0x5f4   :  { %v1059_v30 = vpop.f32.mrb[14].mxu1 }
 0x5f5   :  { %v1063_v31 = vadd.f32 %v1642_v49, %v1062_v27  ;;  %v1376_v33 = vpop.f32.mrb[15].mxu1  ;;  %v1136_v30 = vld [vmem:[%s1844_s7] sm:$0x1] }
 0x5f7   :  { %v1068_v42 = vadd.f32 %v1762_v43, %v1063_v31 }
 0x5f9   :  { %v1069_v35 = vmax.f32 %v1068_v42, 0.0 }
 0x5fb   :  { %v1071_v17 = vsel %vm1070_vm12, %v1069_v35, 0.0 }
 0x5fc   :  { %1072 = vadd.xlane.f32.xlu0 %v1071_v17 }
 0x689   :  { %v1073_v60 = vpop.xlane.xlu0 %1072 }
 0x68a   :  { %v1075_v59 = vsel %vm1074_vm13, %v1073_v60, 0.0 }
 0x68b   :  { %v1076_v24 = vrot.slane %v1075_v59, 4 }
 0x68d   :  { %v1077_v34 = vadd.f32 %v1076_v24, %v1075_v59 }
 0x68f   :  { %v1078_v36 = vrot.slane %v1077_v34, 2 }
 0x691   :  { %v1079_v37 = vadd.f32 %v1078_v36, %v1077_v34 }
 0x693   :  { %v1080_v38 = vrot.slane %v1079_v37, 1 }
 0x695   :  { %v1081_v39 = vadd.f32 %v1080_v38, %v1079_v37 }
 0x697   :  { %v1082_v6 = vmul.f32 0.015625, %v1081_v39 }
 0x699   :  { %v1083_v49 = vsub.f32 %v1069_v35, %v1082_v6 }
 0x69b   :  { %v1084_v40 = vmul.f32 %v1083_v49, %v1083_v49 }
 0x69d   :  { %v1085_v41 = vsel %vm1070_vm12, %v1084_v40, 0.0 }
 0x69e   :  { %1086 = vadd.xlane.f32.xlu1 %v1085_v41 }
 0x72b   :  { %v1087_v43 = vpop.xlane.xlu1 %1086 }
 0x72c   :  { %v1088_v44 = vsel %vm1074_vm13, %v1087_v43, 0.0 }
 0x72d   :  { %v1089_v45 = vrot.slane %v1088_v44, 4 }
 0x72f   :  { %v1090_v46 = vadd.f32 %v1089_v45, %v1088_v44 }
 0x731   :  { %v1091_v47 = vrot.slane %v1090_v46, 2 }
 0x733   :  { %v1092_v48 = vadd.f32 %v1091_v47, %v1090_v46 }
 0x735   :  { %v1093_v50 = vrot.slane %v1092_v48, 1 }
 0x737   :  { %v1094_v0 = vadd.f32 %v1093_v50, %v1092_v48 }
 0x739   :  { %v1095_v11 = vmul.f32 0.015625, %v1094_v0 }
 0x73b   :  { %v1096_v51 = vadd.f32 1e-05, %v1095_v11 }
 0x73d   :  { %1428 = vrsqrt.f32 %v1096_v51 }
 0x747   :  { %v1429_v52 = vpop.eup %1428 }
 0x748   :  { %v1098_v53 = vmul.f32 %v1429_v52, %v1083_v49 }
 0x74a   :  { %v1099_v12 = vmul.f32 %v1704_v54, %v1098_v53 }
 0x74c   :  { %v1100_v55 = vsel %vm1070_vm12, %v1099_v12, 0.0 }
 0x74d   :  { %1101 = vadd.xlane.f32.xlu0 %v1100_v55 }
 0x7da   :  { %v1102_v57 = vpop.xlane.xlu0 %1101 }
 0x7db   :  { %v1103_v58 = vmul.f32 0.17677669, %v1102_v57 }
 0x7dd   :  { %v1104_v61 = vsel %vm1074_vm13, %v1103_v58, -inf }
 0x7de   :  { %v1105_v54 = vrot.slane %v1104_v61, 4 }
 0x7e0   :  { %v1106_v62 = vmax.f32 %v1104_v61, %v1105_v54 }
 0x7e2   :  { %v1107_v2 = vrot.slane %v1106_v62, 2 }
 0x7e4   :  { %v1108_v28 = vmax.f32 %v1106_v62, %v1107_v2 }
 0x7e6   :  { %v1109_v63 = vrot.slane %v1108_v28, 1 }
 0x7e8   :  { %v1110_v1 = vmax.f32 %v1108_v28, %v1109_v63 }
 0x7ea   :  { %v1111_v8 = vsub.f32 %v1103_v58, %v1110_v1 }
 0x7ec   :  { %v1112_v9 = vmul.f32 1.442695, %v1111_v8 }
 0x7ee   :  { %1430 = vpow2.f32 %v1112_v9 }
 0x7f8   :  { %v1431_v10 = vpop.eup %1430 }
 0x7f9   :  { %v1114_v13 = vsel %vm1074_vm13, %v1431_v10, 0.0 }
 0x7fa   :  { %v1115_v14 = vrot.slane %v1114_v13, 4 }
 0x7fc   :  { %v1116_v15 = vadd.f32 %v1115_v14, %v1114_v13 }
 0x7fe   :  { %v1117_v7 = vrot.slane %v1116_v15, 2 }
 0x800   :  { %v1118_v16 = vadd.f32 %v1117_v7, %v1116_v15 }
 0x802   :  { %v1119_v18 = vrot.slane %v1118_v16, 1 }
 0x804   :  { %v1120_v19 = vadd.f32 %v1119_v18, %v1118_v16 }
 0x806   :  { %1432 = vrcp.f32 %v1120_v19 }
 0x810   :  { %v1433_v20 = vpop.eup %1432 }
 0x811   :  { %v1122_v21 = vmul.f32 %v1433_v20, %v1431_v10 }
 0x813   :  { %v1123_v22 = vmul.f32 %v1122_v21, %v1098_v53 }
 0x815   :  { %v1124_v23 = vsel %vm1070_vm12, %v1123_v22, 0.0 }
 0x816   :  { %v1125_v25 = vrot.slane %v1124_v23, 4 }
 0x818   :  { %v1126_v32 = vadd.f32 %v1125_v25, %v1124_v23 }
 0x81a   :  { %v1127_v5 = vrot.slane %v1126_v32, 2 }
 0x81c   :  { %v1128_v26 = vadd.f32 %v1127_v5, %v1126_v32 }
 0x81e   :  { %v1129_v3 = vrot.slane %v1128_v26, 1 }
 0x820   :  { %v1130_v27 = vadd.f32 %v1129_v3, %v1128_v26 }
 0x822   :  { %v1131_v29 = vpack.c.bf16 %v1130_v27, %v1130_v27 }
 0x824   :  { %1382 = vmatmul.mubr.msk.bf16.vlgmr.msra.gmra.mrb[16].mxu0 %vm168_vm2, %v1131_v29 }
 0x8f7   :  { %v1186_v31 = vpop.f32.mrb[16].mxu0 }
 0x8f8   :  { %v1187_v33 = vadd.f32 %v1186_v31, %v1136_v30  ;;  %v1383_v42 = vpop.f32.mrb[17].mxu0 }
 0x8f9   :  { %v1189_v35 = vpop.f32.mrb[18].mxu0 }
 0x8fa   :  { %1192 = vst [vmem:[#allocation2] sm:$0x1] %v1187_v33  ;;  %v1384_v17 = vpop.f32.mrb[19].mxu0 }
 0x8fb   :  { %1445 = shalt.err (!%p1442_p4)
}
 0x8fc   :  { %s1446_s7 = scalar_lea.hbm %s1845_s8, 16 }
 0x8fd   :  { %p1447_p5 = scmp.ne.s32.totalorder %s1845_s8, %s1446_s7  ;;  %p1450_p6 = scmp.lt.u32.totalorder %s1446_s7, %s1845_s8 }
 0x8ff   :  { %p1452_p7 = pnand %p1450_p6, %p1447_p5 }
 0x901   :  { %1455 = shalt.err (!%p1452_p7)
}
 0x902   :  { %1202 = dma.vmem_to_hbm [thread:$0]  %s1200_s29, 16, %s1845_s8, [#allocation3]  }
 0x903   :  { %1456 = dma.done.wait [#allocation3], 16  }
 0x904   :  { %1457 = vsyncadd [#allocation3], 4294967280 }
 0x905   :  { %1206 = vsyncpa [#allocation3], 1 }

</bundles_post_ra>
